<compile_context>
chip_gen: v5e
topology: v5e:2x2
jax: 0.10.0
libtpu: 0.0.40
codegen_flags: <defaults>
</compile_context>

<pallas_src>
import jax
import jax.numpy as jnp
import numpy as np
from jax.experimental import pallas as pl
from jax.experimental.pallas import tpu as pltpu

LANE = 128                      # TPU lane width: pad all channel dims to a multiple.
MATMUL_DTYPE = jnp.float32      # set to jnp.bfloat16 (any gen, incl. v7x) for ~2x MXU
                                # throughput; f32 accumulation is kept via
                                # preferred_element_type. Loosen the test tolerance and
                                # prefer Win % 16 == 0 inputs if you flip this.
VMEM_LIMIT = 32 * 1024 * 1024   # safe scoped-VMEM budget on v5e / v6e / v7x (64 MiB phys).


def _pad_to(x, axis, mult=LANE):
    pad = (-x.shape[axis]) % mult
    if pad == 0:
        return x
    widths = [(0, 0)] * x.ndim
    widths[axis] = (0, pad)
    return jnp.pad(x, widths)


def _round_up(n, m):
    return ((n + m - 1) // m) * m


# ---------------------------------------------------------------------------
# Kernel A: VALID KxK conv (BN scale pre-folded into weights) + bias + ReLU.
# One grid step per batch element; the Cin contraction is an MXU matmul per tap
# with M = Ho*Win (full-width rows, aligned H-axis slices only).
# ---------------------------------------------------------------------------
def _conv_bn_relu_kernel(x_ref, w_ref, bias_ref, o_ref):
    # x_ref:    (1, Hin, Win, Cin)   whole image for batch element b (MATMUL_DTYPE)
    # w_ref:    (KH, KW, Cin, Cout)  HWIO, BN scale folded in, MATMUL_DTYPE
    # bias_ref: (1, Cout)            f32
    # o_ref:    (1, Ho, Wo, Cout)    f32, whole output for batch element b
    KH, KW, Cin, Cout = w_ref.shape
    _, Ho, Wo, _ = o_ref.shape
    Win = x_ref.shape[2]

    for dx in range(KW):
        # Full-width partial sums for this dx: one MXU dot per dy tap, M = Ho*Win.
        z = jnp.zeros((Ho * Win, Cout), jnp.float32)
        for dy in range(KH):
            rows = x_ref[0, pl.ds(dy, Ho), :, :]            # (Ho, Win, Cin); aligned H slice
            z = z + jnp.dot(rows.reshape(Ho * Win, Cin), w_ref[dy, dx],
                            preferred_element_type=jnp.float32)
        # Shift by dx and accumulate into the f32 VMEM output block (keeps vregs free).
        contrib = z.reshape(Ho, Win, Cout)[:, dx:dx + Wo, :]
        if dx == 0:
            o_ref[0] = contrib
        else:
            o_ref[0] = o_ref[0] + contrib
    o_ref[0] = jnp.maximum(o_ref[0] + bias_ref[...], 0.0)


def conv_bn_relu(x_nhwc, w_hwio, bias):
    B, Hin, Win, Cin = x_nhwc.shape
    KH, KW, _, Cout = w_hwio.shape
    Ho, Wo = Hin - KH + 1, Win - KW + 1
    return pl.pallas_call(
        _conv_bn_relu_kernel,
        out_shape=jax.ShapeDtypeStruct((B, Ho, Wo, Cout), jnp.float32),
        grid=(B,),
        in_specs=[
            pl.BlockSpec((1, Hin, Win, Cin), lambda b: (b, 0, 0, 0)),
            pl.BlockSpec((KH, KW, Cin, Cout), lambda b: (0, 0, 0, 0)),
            pl.BlockSpec((1, Cout), lambda b: (0, 0)),
        ],
        out_specs=pl.BlockSpec((1, Ho, Wo, Cout), lambda b: (b, 0, 0, 0)),
        compiler_params=pltpu.CompilerParams(
            dimension_semantics=("parallel",),
            vmem_limit_bytes=VMEM_LIMIT,
        ),
    )(x_nhwc, w_hwio, bias)


# ---------------------------------------------------------------------------
# Kernel B (fused): depthwise cross-correlation (VPU, channels on lanes)
#                   + head 1x1 conv (+folded BN) + ReLU + 1x1 conv + bias (MXU).
# One grid step per batch element. The xcorr feature is accumulated into a
# sublane-padded VMEM scratch so both head matmuls run once with M = Ho*Wp.
# ---------------------------------------------------------------------------
def _xcorr_head_kernel(s_ref, k_ref, w1_ref, b1_ref, w2_ref, b2_ref, o_ref, feat_ref):
    # s_ref: (1, Hs, Ws, C) f32 search feature; k_ref: (1, Hk, Wk, C) f32 template feature
    # w1: (C, C) MATMUL_DTYPE (BN folded), b1: (1, C) f32
    # w2: (C, Op) MATMUL_DTYPE,            b2: (1, Op) f32
    # o_ref: (1, Ho, Wo, Op) f32
    # feat_ref: (Ho, Wp, C) f32 VMEM scratch, Wp = round_up(Wo, 8), pad columns stay 0
    _, Hk, Wk, C = k_ref.shape
    _, Ho, Wo, Op = o_ref.shape
    Ws = s_ref.shape[2]
    Wp = feat_ref.shape[1]

    # Depthwise cross-correlation over all output rows at once (f32 VPU path).
    feat_ref[...] = jnp.zeros_like(feat_ref)
    for q in range(Wk):
        z = jnp.zeros((Ho, Ws, C), jnp.float32)
        for p in range(Hk):
            rows = s_ref[0, pl.ds(p, Ho), :, :]             # (Ho, Ws, C); aligned H slice
            z = z + rows * k_ref[0, p, q:q + 1, :]          # (1, C) broadcast over lanes
        feat_ref[:, :Wo, :] = feat_ref[:, :Wo, :] + z[:, q:q + Wo, :]

    # Head: both 1x1 matmuls once per batch element, M = Ho*Wp (pad columns are zero
    # and get dropped before the store).
    x2 = feat_ref[...].reshape(Ho * Wp, C).astype(MATMUL_DTYPE)
    h = jnp.maximum(
        jnp.dot(x2, w1_ref[...], preferred_element_type=jnp.float32) + b1_ref[...], 0.0)
    out = jnp.dot(h.astype(MATMUL_DTYPE), w2_ref[...],
                  preferred_element_type=jnp.float32) + b2_ref[...]
    o_ref[0] = out.reshape(Ho, Wp, Op)[:, :Wo, :]


def xcorr_head(search_f, kernel_f, w1, b1, w2, b2):
    B, Hs, Ws, C = search_f.shape
    _, Hk, Wk, _ = kernel_f.shape
    Ho, Wo = Hs - Hk + 1, Ws - Wk + 1
    Op = w2.shape[1]
    Wp = _round_up(Wo, 8)
    return pl.pallas_call(
        _xcorr_head_kernel,
        out_shape=jax.ShapeDtypeStruct((B, Ho, Wo, Op), jnp.float32),
        grid=(B,),
        in_specs=[
            pl.BlockSpec((1, Hs, Ws, C), lambda b: (b, 0, 0, 0)),
            pl.BlockSpec((1, Hk, Wk, C), lambda b: (b, 0, 0, 0)),
            pl.BlockSpec((C, C), lambda b: (0, 0)),
            pl.BlockSpec((1, C), lambda b: (0, 0)),
            pl.BlockSpec((C, Op), lambda b: (0, 0)),
            pl.BlockSpec((1, Op), lambda b: (0, 0)),
        ],
        out_specs=pl.BlockSpec((1, Ho, Wo, Op), lambda b: (b, 0, 0, 0)),
        scratch_shapes=[pltpu.VMEM((Ho, Wp, C), jnp.float32)],
        compiler_params=pltpu.CompilerParams(
            dimension_semantics=("parallel",),
            vmem_limit_bytes=VMEM_LIMIT,
        ),
    )(search_f, kernel_f, w1, b1, w2, b2)


# ---------------------------------------------------------------------------
# Parameters / glue
# ---------------------------------------------------------------------------
def fold_bn(gamma, beta, mean, var, eps=1e-5):
    scale = gamma / jnp.sqrt(var + eps)
    bias = beta - mean * scale
    return scale, bias


def init_params(key, cin, hidden, out_ch, ksize=3):
    ks = jax.random.split(key, 8)
    wk_oihw = 0.1 * jax.random.normal(ks[0], (hidden, cin, ksize, ksize), jnp.float32)
    ws_oihw = 0.1 * jax.random.normal(ks[1], (hidden, cin, ksize, ksize), jnp.float32)
    w1_oihw = 0.1 * jax.random.normal(ks[2], (hidden, hidden, 1, 1), jnp.float32)
    w2_oihw = 0.1 * jax.random.normal(ks[3], (out_ch, hidden, 1, 1), jnp.float32)
    b2 = 0.1 * jax.random.normal(ks[4], (out_ch,), jnp.float32)

    def bn_stats(k, c):
        k1, k2, k3, k4 = jax.random.split(k, 4)
        gamma = 1.0 + 0.1 * jax.random.normal(k1, (c,), jnp.float32)
        beta = 0.1 * jax.random.normal(k2, (c,), jnp.float32)
        mean = 0.1 * jax.random.normal(k3, (c,), jnp.float32)
        var = 1.0 + 0.1 * jax.random.uniform(k4, (c,), jnp.float32)
        return gamma, beta, mean, var

    k_bn, s_bn, h_bn = bn_stats(ks[5], hidden), bn_stats(ks[6], hidden), bn_stats(ks[7], hidden)
    k_scale, k_bias = fold_bn(*k_bn)
    s_scale, s_bias = fold_bn(*s_bn)
    h_scale, h_bias = fold_bn(*h_bn)

    # ---- kernel-layout params: BN folded into weights, channels padded to 128,
    # ---- matmul operands pre-cast to MATMUL_DTYPE (no per-tap casts in-kernel) ----
    wk_hwio = jnp.transpose(wk_oihw, (2, 3, 1, 0)) * k_scale[None, None, None, :]
    ws_hwio = jnp.transpose(ws_oihw, (2, 3, 1, 0)) * s_scale[None, None, None, :]
    wk_hwio_p = _pad_to(_pad_to(wk_hwio, 2), 3).astype(MATMUL_DTYPE)    # pad Cin and Cout
    ws_hwio_p = _pad_to(_pad_to(ws_hwio, 2), 3).astype(MATMUL_DTYPE)
    k_bias_p = _pad_to(k_bias.reshape(1, -1), 1)
    s_bias_p = _pad_to(s_bias.reshape(1, -1), 1)

    w1 = w1_oihw[:, :, 0, 0].T * h_scale[None, :]          # (hidden, hidden), BN folded
    w2 = w2_oihw[:, :, 0, 0].T                             # (hidden, out_ch)
    w1_p = _pad_to(_pad_to(w1, 0), 1).astype(MATMUL_DTYPE)
    w2_p = _pad_to(_pad_to(w2, 0), 1).astype(MATMUL_DTYPE)
    h_bias_p = _pad_to(h_bias.reshape(1, -1), 1)
    b2_p = _pad_to(b2.reshape(1, -1), 1)

    return dict(
        # raw (PyTorch-layout) params for the pure-JAX reference
        wk_oihw=wk_oihw, ws_oihw=ws_oihw, w1_oihw=w1_oihw, w2_oihw=w2_oihw,
        b2=b2, k_bn=k_bn, s_bn=s_bn, h_bn=h_bn,
        # kernel-layout (folded + lane-padded + pre-cast) params
        wk_hwio_p=wk_hwio_p, ws_hwio_p=ws_hwio_p,
        k_bias_p=k_bias_p, s_bias_p=s_bias_p,
        w1_p=w1_p, h_bias_p=h_bias_p, w2_p=w2_p, b2_p=b2_p,
        out_channels=out_ch,
    )


def depthwise_xcorr_forward(kernel_nchw, search_nchw, p):
    # NCHW -> NHWC, pad Cin to the lane width, cast matmul operands once here.
    kx = _pad_to(jnp.transpose(kernel_nchw, (0, 2, 3, 1)), 3).astype(MATMUL_DTYPE)
    sx = _pad_to(jnp.transpose(search_nchw, (0, 2, 3, 1)), 3).astype(MATMUL_DTYPE)
    kf = conv_bn_relu(kx, p["wk_hwio_p"], p["k_bias_p"])        # (B, Hk, Wk, Cp) f32
    sf = conv_bn_relu(sx, p["ws_hwio_p"], p["s_bias_p"])        # (B, Hs, Ws, Cp) f32
    out_p = xcorr_head(sf, kf, p["w1_p"], p["h_bias_p"], p["w2_p"], p["b2_p"])
    out = out_p[..., :p["out_channels"]]                        # drop lane padding
    return jnp.transpose(out, (0, 3, 1, 2))                     # NHWC -> NCHW


# ---------------------------------------------------------------------------
# Pure-JAX reference (eval-mode BN), for correctness checking only
# ---------------------------------------------------------------------------
def ref_forward(kernel_nchw, search_nchw, p):
    def conv(x, w_oihw):
        return jax.lax.conv_general_dilated(
            x, w_oihw, (1, 1), "VALID",
            dimension_numbers=("NCHW", "OIHW", "NCHW"))

    def bn(x, g, b, m, v, eps=1e-5):
        inv = g / jnp.sqrt(v + eps)
        return (x - m[None, :, None, None]) * inv[None, :, None, None] + b[None, :, None, None]

    k = jax.nn.relu(bn(conv(kernel_nchw, p["wk_oihw"]), *p["k_bn"]))
    s = jax.nn.relu(bn(conv(search_nchw, p["ws_oihw"]), *p["s_bn"]))

    B, C, Hk, Wk = k.shape
    _, _, Hs, Ws = s.shape
    xc = jax.lax.conv_general_dilated(
        s.reshape(1, B * C, Hs, Ws), k.reshape(B * C, 1, Hk, Wk),
        (1, 1), "VALID", dimension_numbers=("NCHW", "OIHW", "NCHW"),
        feature_group_count=B * C)
    xc = xc.reshape(B, C, xc.shape[2], xc.shape[3])

    h = jax.nn.relu(bn(conv(xc, p["w1_oihw"]), *p["h_bn"]))
    return conv(h, p["w2_oihw"]) + p["b2"][None, :, None, None]


if __name__ == "__main__":
    B, CIN, HIDDEN, OUT, KSIZE = 2, 4, 8, 4, 3
    key = jax.random.PRNGKey(0)
    kp, ki, si = jax.random.split(key, 3)
    params = init_params(kp, CIN, HIDDEN, OUT, KSIZE)

    kernel_in = jax.random.normal(ki, (B, CIN, 8, 8), jnp.float32)    # template (NCHW)
    search_in = jax.random.normal(si, (B, CIN, 16, 16), jnp.float32)  # search   (NCHW)

    out = depthwise_xcorr_forward(kernel_in, search_in, params)
    out = jax.block_until_ready(out)

    ref = ref_forward(kernel_in, search_in, params)
    assert out.shape == (B, OUT, 9, 9), out.shape
    # Tolerance covers BN-fold reassociation and MXU-path f32 rounding differences.
    np.testing.assert_allclose(np.asarray(out), np.asarray(ref), rtol=1e-3, atol=1e-3)
    print("KERNEL_OK")
</pallas_src>

<mosaic_0001>
module attributes {stable_mosaic.version = 11 : i64} {
  func.func @_conv_bn_relu_kernel(%arg0: i32, %arg1: memref<1x8x8x128xf32, #tpu.memory_space<vmem>>, %arg2: memref<3x3x128x128xf32, #tpu.memory_space<vmem>>, %arg3: memref<1x128xf32, #tpu.memory_space<vmem>>, %arg4: memref<1x6x6x128xf32, #tpu.memory_space<vmem>>) attributes {dimension_semantics = [#tpu.dimension_semantics<parallel>], iteration_bounds = array<i64: 2>, scalar_prefetch = 0 : i64, scratch_operands = 0 : i64, tpu.core_type = #tpu.core_type<tc>, window_params = [{transform_indices = @transform_0, window_bounds = array<i64: 1, 8, 8, 128>}, {pipeline_mode = #tpu.pipeline_mode<synchronous>, transform_indices = @transform_1, window_bounds = array<i64: 3, 3, 128, 128>}, {pipeline_mode = #tpu.pipeline_mode<synchronous>, transform_indices = @transform_2, window_bounds = array<i64: 1, 128>}, {transform_indices = @transform_3, window_bounds = array<i64: 1, 6, 6, 128>}]} {
    %cst = arith.constant 0.000000e+00 : f32
    %0 = vector.broadcast %cst : f32 to vector<48x128xf32>
    %c0 = arith.constant 0 : index
    %c0_0 = arith.constant 0 : index
    %c0_1 = arith.constant 0 : index
    %c0_2 = arith.constant 0 : index
    %1 = vector.load %arg1[%c0, %c0_0, %c0_1, %c0_2] : memref<1x8x8x128xf32, #tpu.memory_space<vmem>>, vector<1x6x8x128xf32>
    %2 = vector.shape_cast %1 : vector<1x6x8x128xf32> to vector<6x8x128xf32>
    %3 = vector.shape_cast %2 : vector<6x8x128xf32> to vector<48x128xf32>
    %c0_3 = arith.constant 0 : index
    %c0_4 = arith.constant 0 : index
    %c0_5 = arith.constant 0 : index
    %c0_6 = arith.constant 0 : index
    %4 = vector.load %arg2[%c0_3, %c0_4, %c0_5, %c0_6] : memref<3x3x128x128xf32, #tpu.memory_space<vmem>>, vector<1x1x128x128xf32>
    %5 = vector.shape_cast %4 : vector<1x1x128x128xf32> to vector<128x128xf32>
    %cst_7 = arith.constant dense<0.000000e+00> : vector<48x128xf32>
    %6 = tpu.matmul %3, %5, %cst_7 {dimension_numbers = #tpu.dot_dimension_numbers<[1], [0], [0], [1], [0, 0, 1, 1], [], []>} : vector<48x128xf32>, vector<128x128xf32>, vector<48x128xf32> -> vector<48x128xf32>
    %7 = arith.addf %0, %6 : vector<48x128xf32>
    %c0_8 = arith.constant 0 : index
    %c1 = arith.constant 1 : index
    %c0_9 = arith.constant 0 : index
    %c0_10 = arith.constant 0 : index
    %8 = vector.load %arg1[%c0_8, %c1, %c0_9, %c0_10] : memref<1x8x8x128xf32, #tpu.memory_space<vmem>>, vector<1x6x8x128xf32>
    %9 = vector.shape_cast %8 : vector<1x6x8x128xf32> to vector<6x8x128xf32>
    %10 = vector.shape_cast %9 : vector<6x8x128xf32> to vector<48x128xf32>
    %c1_11 = arith.constant 1 : index
    %c0_12 = arith.constant 0 : index
    %c0_13 = arith.constant 0 : index
    %c0_14 = arith.constant 0 : index
    %11 = vector.load %arg2[%c1_11, %c0_12, %c0_13, %c0_14] : memref<3x3x128x128xf32, #tpu.memory_space<vmem>>, vector<1x1x128x128xf32>
    %12 = vector.shape_cast %11 : vector<1x1x128x128xf32> to vector<128x128xf32>
    %cst_15 = arith.constant dense<0.000000e+00> : vector<48x128xf32>
    %13 = tpu.matmul %10, %12, %cst_15 {dimension_numbers = #tpu.dot_dimension_numbers<[1], [0], [0], [1], [0, 0, 1, 1], [], []>} : vector<48x128xf32>, vector<128x128xf32>, vector<48x128xf32> -> vector<48x128xf32>
    %14 = arith.addf %7, %13 : vector<48x128xf32>
    %c0_16 = arith.constant 0 : index
    %c2 = arith.constant 2 : index
    %c0_17 = arith.constant 0 : index
    %c0_18 = arith.constant 0 : index
    %15 = vector.load %arg1[%c0_16, %c2, %c0_17, %c0_18] : memref<1x8x8x128xf32, #tpu.memory_space<vmem>>, vector<1x6x8x128xf32>
    %16 = vector.shape_cast %15 : vector<1x6x8x128xf32> to vector<6x8x128xf32>
    %17 = vector.shape_cast %16 : vector<6x8x128xf32> to vector<48x128xf32>
    %c2_19 = arith.constant 2 : index
    %c0_20 = arith.constant 0 : index
    %c0_21 = arith.constant 0 : index
    %c0_22 = arith.constant 0 : index
    %18 = vector.load %arg2[%c2_19, %c0_20, %c0_21, %c0_22] : memref<3x3x128x128xf32, #tpu.memory_space<vmem>>, vector<1x1x128x128xf32>
    %19 = vector.shape_cast %18 : vector<1x1x128x128xf32> to vector<128x128xf32>
    %cst_23 = arith.constant dense<0.000000e+00> : vector<48x128xf32>
    %20 = tpu.matmul %17, %19, %cst_23 {dimension_numbers = #tpu.dot_dimension_numbers<[1], [0], [0], [1], [0, 0, 1, 1], [], []>} : vector<48x128xf32>, vector<128x128xf32>, vector<48x128xf32> -> vector<48x128xf32>
    %21 = arith.addf %14, %20 : vector<48x128xf32>
    %22 = vector.shape_cast %21 : vector<48x128xf32> to vector<6x8x128xf32>
    %23 = vector.extract_strided_slice %22 {offsets = [0, 0, 0], sizes = [6, 6, 128], strides = [1, 1, 1]} : vector<6x8x128xf32> to vector<6x6x128xf32>
    %c0_24 = arith.constant 0 : index
    %c0_25 = arith.constant 0 : index
    %c0_26 = arith.constant 0 : index
    %c0_27 = arith.constant 0 : index
    %24 = vector.load %arg4[%c0_24, %c0_25, %c0_26, %c0_27] : memref<1x6x6x128xf32, #tpu.memory_space<vmem>>, vector<1x6x6x128xf32>
    %25 = vector.shape_cast %24 : vector<1x6x6x128xf32> to vector<6x6x128xf32>
    %26 = vector.shape_cast %23 : vector<6x6x128xf32> to vector<1x6x6x128xf32>
    tpu.vector_store %arg4[%c0_24, %c0_25, %c0_26, %c0_27], %26 {strides = array<i32>} : memref<1x6x6x128xf32, #tpu.memory_space<vmem>>, vector<1x6x6x128xf32>,
    %cst_28 = arith.constant 0.000000e+00 : f32
    %27 = vector.broadcast %cst_28 : f32 to vector<48x128xf32>
    %c0_29 = arith.constant 0 : index
    %c0_30 = arith.constant 0 : index
    %c0_31 = arith.constant 0 : index
    %c0_32 = arith.constant 0 : index
    %28 = vector.load %arg1[%c0_29, %c0_30, %c0_31, %c0_32] : memref<1x8x8x128xf32, #tpu.memory_space<vmem>>, vector<1x6x8x128xf32>
    %29 = vector.shape_cast %28 : vector<1x6x8x128xf32> to vector<6x8x128xf32>
    %30 = vector.shape_cast %29 : vector<6x8x128xf32> to vector<48x128xf32>
    %c0_33 = arith.constant 0 : index
    %c1_34 = arith.constant 1 : index
    %c0_35 = arith.constant 0 : index
    %c0_36 = arith.constant 0 : index
    %31 = vector.load %arg2[%c0_33, %c1_34, %c0_35, %c0_36] : memref<3x3x128x128xf32, #tpu.memory_space<vmem>>, vector<1x1x128x128xf32>
    %32 = vector.shape_cast %31 : vector<1x1x128x128xf32> to vector<128x128xf32>
    %cst_37 = arith.constant dense<0.000000e+00> : vector<48x128xf32>
    %33 = tpu.matmul %30, %32, %cst_37 {dimension_numbers = #tpu.dot_dimension_numbers<[1], [0], [0], [1], [0, 0, 1, 1], [], []>} : vector<48x128xf32>, vector<128x128xf32>, vector<48x128xf32> -> vector<48x128xf32>
    %34 = arith.addf %27, %33 : vector<48x128xf32>
    %c0_38 = arith.constant 0 : index
    %c1_39 = arith.constant 1 : index
    %c0_40 = arith.constant 0 : index
    %c0_41 = arith.constant 0 : index
    %35 = vector.load %arg1[%c0_38, %c1_39, %c0_40, %c0_41] : memref<1x8x8x128xf32, #tpu.memory_space<vmem>>, vector<1x6x8x128xf32>
    %36 = vector.shape_cast %35 : vector<1x6x8x128xf32> to vector<6x8x128xf32>
    %37 = vector.shape_cast %36 : vector<6x8x128xf32> to vector<48x128xf32>
    %c1_42 = arith.constant 1 : index
    %c1_43 = arith.constant 1 : index
    %c0_44 = arith.constant 0 : index
    %c0_45 = arith.constant 0 : index
    %38 = vector.load %arg2[%c1_42, %c1_43, %c0_44, %c0_45] : memref<3x3x128x128xf32, #tpu.memory_space<vmem>>, vector<1x1x128x128xf32>
    %39 = vector.shape_cast %38 : vector<1x1x128x128xf32> to vector<128x128xf32>
    %cst_46 = arith.constant dense<0.000000e+00> : vector<48x128xf32>
    %40 = tpu.matmul %37, %39, %cst_46 {dimension_numbers = #tpu.dot_dimension_numbers<[1], [0], [0], [1], [0, 0, 1, 1], [], []>} : vector<48x128xf32>, vector<128x128xf32>, vector<48x128xf32> -> vector<48x128xf32>
    %41 = arith.addf %34, %40 : vector<48x128xf32>
    %c0_47 = arith.constant 0 : index
    %c2_48 = arith.constant 2 : index
    %c0_49 = arith.constant 0 : index
    %c0_50 = arith.constant 0 : index
    %42 = vector.load %arg1[%c0_47, %c2_48, %c0_49, %c0_50] : memref<1x8x8x128xf32, #tpu.memory_space<vmem>>, vector<1x6x8x128xf32>
    %43 = vector.shape_cast %42 : vector<1x6x8x128xf32> to vector<6x8x128xf32>
    %44 = vector.shape_cast %43 : vector<6x8x128xf32> to vector<48x128xf32>
    %c2_51 = arith.constant 2 : index
    %c1_52 = arith.constant 1 : index
    %c0_53 = arith.constant 0 : index
    %c0_54 = arith.constant 0 : index
    %45 = vector.load %arg2[%c2_51, %c1_52, %c0_53, %c0_54] : memref<3x3x128x128xf32, #tpu.memory_space<vmem>>, vector<1x1x128x128xf32>
    %46 = vector.shape_cast %45 : vector<1x1x128x128xf32> to vector<128x128xf32>
    %cst_55 = arith.constant dense<0.000000e+00> : vector<48x128xf32>
    %47 = tpu.matmul %44, %46, %cst_55 {dimension_numbers = #tpu.dot_dimension_numbers<[1], [0], [0], [1], [0, 0, 1, 1], [], []>} : vector<48x128xf32>, vector<128x128xf32>, vector<48x128xf32> -> vector<48x128xf32>
    %48 = arith.addf %41, %47 : vector<48x128xf32>
    %49 = vector.shape_cast %48 : vector<48x128xf32> to vector<6x8x128xf32>
    %50 = vector.extract_strided_slice %49 {offsets = [0, 1, 0], sizes = [6, 6, 128], strides = [1, 1, 1]} : vector<6x8x128xf32> to vector<6x6x128xf32>
    %c0_56 = arith.constant 0 : index
    %c0_57 = arith.constant 0 : index
    %c0_58 = arith.constant 0 : index
    %c0_59 = arith.constant 0 : index
    %51 = vector.load %arg4[%c0_56, %c0_57, %c0_58, %c0_59] : memref<1x6x6x128xf32, #tpu.memory_space<vmem>>, vector<1x6x6x128xf32>
    %52 = vector.shape_cast %51 : vector<1x6x6x128xf32> to vector<6x6x128xf32>
    %53 = arith.addf %52, %50 : vector<6x6x128xf32>
    %c0_60 = arith.constant 0 : index
    %c0_61 = arith.constant 0 : index
    %c0_62 = arith.constant 0 : index
    %c0_63 = arith.constant 0 : index
    %54 = vector.load %arg4[%c0_60, %c0_61, %c0_62, %c0_63] : memref<1x6x6x128xf32, #tpu.memory_space<vmem>>, vector<1x6x6x128xf32>
    %55 = vector.shape_cast %54 : vector<1x6x6x128xf32> to vector<6x6x128xf32>
    %56 = vector.shape_cast %53 : vector<6x6x128xf32> to vector<1x6x6x128xf32>
    tpu.vector_store %arg4[%c0_60, %c0_61, %c0_62, %c0_63], %56 {strides = array<i32>} : memref<1x6x6x128xf32, #tpu.memory_space<vmem>>, vector<1x6x6x128xf32>,
    %cst_64 = arith.constant 0.000000e+00 : f32
    %57 = vector.broadcast %cst_64 : f32 to vector<48x128xf32>
    %c0_65 = arith.constant 0 : index
    %c0_66 = arith.constant 0 : index
    %c0_67 = arith.constant 0 : index
    %c0_68 = arith.constant 0 : index
    %58 = vector.load %arg1[%c0_65, %c0_66, %c0_67, %c0_68] : memref<1x8x8x128xf32, #tpu.memory_space<vmem>>, vector<1x6x8x128xf32>
    %59 = vector.shape_cast %58 : vector<1x6x8x128xf32> to vector<6x8x128xf32>
    %60 = vector.shape_cast %59 : vector<6x8x128xf32> to vector<48x128xf32>
    %c0_69 = arith.constant 0 : index
    %c2_70 = arith.constant 2 : index
    %c0_71 = arith.constant 0 : index
    %c0_72 = arith.constant 0 : index
    %61 = vector.load %arg2[%c0_69, %c2_70, %c0_71, %c0_72] : memref<3x3x128x128xf32, #tpu.memory_space<vmem>>, vector<1x1x128x128xf32>
    %62 = vector.shape_cast %61 : vector<1x1x128x128xf32> to vector<128x128xf32>
    %cst_73 = arith.constant dense<0.000000e+00> : vector<48x128xf32>
    %63 = tpu.matmul %60, %62, %cst_73 {dimension_numbers = #tpu.dot_dimension_numbers<[1], [0], [0], [1], [0, 0, 1, 1], [], []>} : vector<48x128xf32>, vector<128x128xf32>, vector<48x128xf32> -> vector<48x128xf32>
    %64 = arith.addf %57, %63 : vector<48x128xf32>
    %c0_74 = arith.constant 0 : index
    %c1_75 = arith.constant 1 : index
    %c0_76 = arith.constant 0 : index
    %c0_77 = arith.constant 0 : index
    %65 = vector.load %arg1[%c0_74, %c1_75, %c0_76, %c0_77] : memref<1x8x8x128xf32, #tpu.memory_space<vmem>>, vector<1x6x8x128xf32>
    %66 = vector.shape_cast %65 : vector<1x6x8x128xf32> to vector<6x8x128xf32>
    %67 = vector.shape_cast %66 : vector<6x8x128xf32> to vector<48x128xf32>
    %c1_78 = arith.constant 1 : index
    %c2_79 = arith.constant 2 : index
    %c0_80 = arith.constant 0 : index
    %c0_81 = arith.constant 0 : index
    %68 = vector.load %arg2[%c1_78, %c2_79, %c0_80, %c0_81] : memref<3x3x128x128xf32, #tpu.memory_space<vmem>>, vector<1x1x128x128xf32>
    %69 = vector.shape_cast %68 : vector<1x1x128x128xf32> to vector<128x128xf32>
    %cst_82 = arith.constant dense<0.000000e+00> : vector<48x128xf32>
    %70 = tpu.matmul %67, %69, %cst_82 {dimension_numbers = #tpu.dot_dimension_numbers<[1], [0], [0], [1], [0, 0, 1, 1], [], []>} : vector<48x128xf32>, vector<128x128xf32>, vector<48x128xf32> -> vector<48x128xf32>
    %71 = arith.addf %64, %70 : vector<48x128xf32>
    %c0_83 = arith.constant 0 : index
    %c2_84 = arith.constant 2 : index
    %c0_85 = arith.constant 0 : index
    %c0_86 = arith.constant 0 : index
    %72 = vector.load %arg1[%c0_83, %c2_84, %c0_85, %c0_86] : memref<1x8x8x128xf32, #tpu.memory_space<vmem>>, vector<1x6x8x128xf32>
    %73 = vector.shape_cast %72 : vector<1x6x8x128xf32> to vector<6x8x128xf32>
    %74 = vector.shape_cast %73 : vector<6x8x128xf32> to vector<48x128xf32>
    %c2_87 = arith.constant 2 : index
    %c2_88 = arith.constant 2 : index
    %c0_89 = arith.constant 0 : index
    %c0_90 = arith.constant 0 : index
    %75 = vector.load %arg2[%c2_87, %c2_88, %c0_89, %c0_90] : memref<3x3x128x128xf32, #tpu.memory_space<vmem>>, vector<1x1x128x128xf32>
    %76 = vector.shape_cast %75 : vector<1x1x128x128xf32> to vector<128x128xf32>
    %cst_91 = arith.constant dense<0.000000e+00> : vector<48x128xf32>
    %77 = tpu.matmul %74, %76, %cst_91 {dimension_numbers = #tpu.dot_dimension_numbers<[1], [0], [0], [1], [0, 0, 1, 1], [], []>} : vector<48x128xf32>, vector<128x128xf32>, vector<48x128xf32> -> vector<48x128xf32>
    %78 = arith.addf %71, %77 : vector<48x128xf32>
    %79 = vector.shape_cast %78 : vector<48x128xf32> to vector<6x8x128xf32>
    %80 = vector.extract_strided_slice %79 {offsets = [0, 2, 0], sizes = [6, 6, 128], strides = [1, 1, 1]} : vector<6x8x128xf32> to vector<6x6x128xf32>
    %c0_92 = arith.constant 0 : index
    %c0_93 = arith.constant 0 : index
    %c0_94 = arith.constant 0 : index
    %c0_95 = arith.constant 0 : index
    %81 = vector.load %arg4[%c0_92, %c0_93, %c0_94, %c0_95] : memref<1x6x6x128xf32, #tpu.memory_space<vmem>>, vector<1x6x6x128xf32>
    %82 = vector.shape_cast %81 : vector<1x6x6x128xf32> to vector<6x6x128xf32>
    %83 = arith.addf %82, %80 : vector<6x6x128xf32>
    %c0_96 = arith.constant 0 : index
    %c0_97 = arith.constant 0 : index
    %c0_98 = arith.constant 0 : index
    %c0_99 = arith.constant 0 : index
    %84 = vector.load %arg4[%c0_96, %c0_97, %c0_98, %c0_99] : memref<1x6x6x128xf32, #tpu.memory_space<vmem>>, vector<1x6x6x128xf32>
    %85 = vector.shape_cast %84 : vector<1x6x6x128xf32> to vector<6x6x128xf32>
    %86 = vector.shape_cast %83 : vector<6x6x128xf32> to vector<1x6x6x128xf32>
    tpu.vector_store %arg4[%c0_96, %c0_97, %c0_98, %c0_99], %86 {strides = array<i32>} : memref<1x6x6x128xf32, #tpu.memory_space<vmem>>, vector<1x6x6x128xf32>,
    %c0_100 = arith.constant 0 : index
    %c0_101 = arith.constant 0 : index
    %c0_102 = arith.constant 0 : index
    %c0_103 = arith.constant 0 : index
    %87 = vector.load %arg4[%c0_100, %c0_101, %c0_102, %c0_103] : memref<1x6x6x128xf32, #tpu.memory_space<vmem>>, vector<1x6x6x128xf32>
    %88 = vector.shape_cast %87 : vector<1x6x6x128xf32> to vector<6x6x128xf32>
    %c0_104 = arith.constant 0 : index
    %c0_105 = arith.constant 0 : index
    %89 = vector.load %arg3[%c0_104, %c0_105] : memref<1x128xf32, #tpu.memory_space<vmem>>, vector<1x128xf32>
    %90 = vector.shape_cast %89 : vector<1x128xf32> to vector<1x1x128xf32>
    %91 = vector.broadcast %90 : vector<1x1x128xf32> to vector<6x6x128xf32>
    %92 = arith.addf %88, %91 : vector<6x6x128xf32>
    %cst_106 = arith.constant 0.000000e+00 : f32
    %93 = vector.broadcast %cst_106 : f32 to vector<6x6x128xf32>
    %94 = arith.maximumf %92, %93 : vector<6x6x128xf32>
    %c0_107 = arith.constant 0 : index
    %c0_108 = arith.constant 0 : index
    %c0_109 = arith.constant 0 : index
    %c0_110 = arith.constant 0 : index
    %95 = vector.load %arg4[%c0_107, %c0_108, %c0_109, %c0_110] : memref<1x6x6x128xf32, #tpu.memory_space<vmem>>, vector<1x6x6x128xf32>
    %96 = vector.shape_cast %95 : vector<1x6x6x128xf32> to vector<6x6x128xf32>
    %97 = vector.shape_cast %94 : vector<6x6x128xf32> to vector<1x6x6x128xf32>
    tpu.vector_store %arg4[%c0_107, %c0_108, %c0_109, %c0_110], %97 {strides = array<i32>} : memref<1x6x6x128xf32, #tpu.memory_space<vmem>>, vector<1x6x6x128xf32>,
    return
  }
  func.func @transform_0(%arg0: i32) -> (i32, i32, i32, i32) {
    %c0_i32 = arith.constant 0 : i32
    %c0_i32_0 = arith.constant 0 : i32
    %c0_i32_1 = arith.constant 0 : i32
    %c0_i32_2 = arith.constant 0 : i32
    return %arg0, %c0_i32, %c0_i32_0, %c0_i32_1 : i32, i32, i32, i32
  }
  func.func @transform_1(%arg0: i32) -> (i32, i32, i32, i32) {
    %c0_i32 = arith.constant 0 : i32
    %c0_i32_0 = arith.constant 0 : i32
    %c0_i32_1 = arith.constant 0 : i32
    %c0_i32_2 = arith.constant 0 : i32
    %c0_i32_3 = arith.constant 0 : i32
    return %c0_i32, %c0_i32_0, %c0_i32_1, %c0_i32_2 : i32, i32, i32, i32
  }
  func.func @transform_2(%arg0: i32) -> (i32, i32) {
    %c0_i32 = arith.constant 0 : i32
    %c0_i32_0 = arith.constant 0 : i32
    %c0_i32_1 = arith.constant 0 : i32
    return %c0_i32, %c0_i32_0 : i32, i32
  }
  func.func @transform_3(%arg0: i32) -> (i32, i32, i32, i32) {
    %c0_i32 = arith.constant 0 : i32
    %c0_i32_0 = arith.constant 0 : i32
    %c0_i32_1 = arith.constant 0 : i32
    %c0_i32_2 = arith.constant 0 : i32
    return %arg0, %c0_i32, %c0_i32_0, %c0_i32_1 : i32, i32, i32, i32
  }
}

</mosaic_0001>

<bundles_post_ra>
// kernel: tpu_custom_call.1
= control target key start
LH: loop header
LB: loop body
LE: loop exit
PB: predicated region body
PF: predicated region fallthrough
CT: control target
= control target key end

     0   :  { %8 = vsyncpa [#allocation3], 0  ;;  %s1460_s0 = inlined_call_operand.hbm [shape: f32[2,8,8,128], index: 0, kind: input, shape index: {}]   ;;  %s1461_s1 = inlined_call_operand.hbm [shape: f32[3,3,128,128], index: 1, kind: input, shape index: {}]   ;;  %s1462_s2 = inlined_call_operand.vmem [shape: f32[1,128], index: 2, kind: input, shape index: {}]   ;;  %s1463_s3 = inlined_call_operand.vmem [shape: f32[2,6,6,128], index: 3, kind: output, shape index: {}]  }
   0x1   :  { %10 = vsyncpa [#allocation3 + $0x1], 0 }
   0x2   :  { %11 = vsyncpa [#allocation5], 0  ;;  %s1193_s12 = smov 0   ;;  %s1195_s13 = smov 0  }
   0x3   :  { %s1197_s14 = smov 0   ;;  %s1199_s15 = smov 0  }
   0x4 LB: > { %s1212_s16 = sadd.s32 4294967295, %s1168_s15   ;;  %p37_p0 = scmp.ne.s32.totalorder %s1160_s13, %s1156_s12  ;;  %s1168_s15 = sphi %s1199_s15, %s1470_s15   ;;  %s1164_s14 = sphi %s1197_s14, %s1469_s14   ;;  %s1160_s13 = sphi %s1195_s13, %s1468_s13   ;;  %s1156_s12 = sphi %s1193_s12, %s1467_s12  }
   0x5   : > { %p38_p1 = scmp.eq.s32.totalorder %s1212_s16, 0  ;;  %p935_p2 = scmp.ge.s32.totalorder %s1168_s15, 1 }
   0x6   : > { %p116_p3 = scmp.lt.s32.totalorder %s1168_s15, 3  ;;  %s127_s20 = sshll.u32 %s1461_s1, 4  ;;  %s128_s20 = int_to_ptr.hbm [resolvable:$true] %s127_s20 }
   0x7   : > { %p1220_p4 = por %p38_p1, %p37_p0  ;;  %s1170_s22 = smov [#allocation4]  }
   0x8   : > { %p1227_p5 = pnand %p935_p2, %p116_p3  ;;  %s129_s23 = sshll.u32 %s1170_s22, 4  ;;  %s130_s23 = int_to_ptr.vmem [resolvable:$true] %s129_s23 }
   0x9   : > { %s1236_s24 = sadd.s32 1, %s1168_s15   ;;  %s1171_s25 = smov 128  }
   0xa   : > { %p1023_p6 = pneg %p1227_p5  ;;  %s1172_s26 = smov 8  }
   0xb   : > { %s21_s27 = ssub.s32 %s1168_s15, %s1236_s24  ;;  %s24_s28 = sadd.s32 1, %s1164_s14 }
   0xc   : > { %p1024_p7 = pnand %p1023_p6, %p38_p1  ;;  %p22_p8 = scmp.eq.s32.totalorder %s21_s27, 0 }
   0xd   : > { %p31_p9 = scmp.ne.s32.totalorder %s1164_s14, %s1160_s13  ;;  %p32_p10 = scmp.eq.s32.totalorder %s1168_s15, 0 }
   0xe   : > { %1026 = dma.hbm_to_vmem [thread:$0]  (!%p1024_p7), %s128_s20, 18432, %s130_s23, [#allocation5], %s1171_s25, %s1171_s25, %s1172_s26  }
   0xf   : > { %p1032_p11 = scmp.lt.s32.totalorder %s1168_s15, 2  ;;  %p33_p12 = por %p32_p10, %p31_p9 }
  0x10   : > { %s1249_s29 = scalar_select %p22_p8, %s1164_s14, %s24_s28  }
  0x11   : > { %s146_s30 = sand.u32 1, %s1164_s14   ;;  %s983_s5 = sshll.u32 %s1168_s15, 6 }
  0x12   : > { %s938_s4 = sshll.u32 %s146_s30, 6  ;;  %s155_s8 = scalar_lea.hbm %s1460_s0, %s983_s5 }
  0x13   : > { %s150_s9 = scalar_lea.vmem [#allocation2], %s938_s4  ;;  %s156_s11 = sshll.u32 %s155_s8, 4  ;;  %s157_s11 = int_to_ptr.hbm [resolvable:$true] %s156_s11 }
  0x14   : > { %s158_s10 = sshll.u32 %s150_s9, 4  ;;  %p1256_p13 = pnand %p1032_p11, %p33_p12  ;;  %s159_s10 = int_to_ptr.vmem [resolvable:$true] %s158_s10 }
  0x15   : > { %s147_s18 = scalar_lea.sflag [#allocation3], %s146_s30  ;;  %s1100_s19 = sshra.s32 %s157_s11, 4  ;;  %s1101_s19 = int_to_ptr.hbm [resolvable:$true] %s1100_s19 }
  0x16   : > { %s1102_s20 = scalar_lea.hbm %s1101_s19, 64  ;;  %p1104_p2 = pneg %p1256_p13 }
  0x17   : > { %p1103_p0 = scmp.ne.s32.totalorder %s1101_s19, %s1102_s20  ;;  %s1107_s23 = scalar_lea.hbm %s1460_s0, 128 }
  0x18   : > { %p1108_p7 = scmp.lt.s32.totalorder %s1101_s19, %s1460_s0  ;;  %p1109_p8 = scmp.lt.s32.totalorder %s1107_s23, %s1102_s20 }
  0x19   : > { %p1105_p3 = pnand %p1104_p2, %p1103_p0 }
  0x1a   : > { %p1110_p9 = por %p1109_p8, %p1108_p7 }
  0x1b   : > { %p1106_p6 = pneg %p1105_p3 }
  0x1d   : > { %p1111_p10 = pnand %p1110_p9, %p1106_p6 }
  0x1f   : > { %1114 = shalt.err (!%p1111_p10)
}
  0x20   : > { %1030 = dma.hbm_to_vmem [thread:$0]  (!%p1256_p13), %s157_s11, 1024, %s159_s10, %s147_s18, %s1171_s25, %s1171_s25, %s1172_s26  }
  0x21   : > { %170 = sbr.rel (%p1227_p5) target bundleno = 348 (0x15c), region = 32  ;;  %s172_s30 = sand.u32 (!%p1227_p5), 1, %s1160_s13  }
  0x22   : > { %s942_s4 = sshll.u32 (!%p1227_p5), %s172_s30, 6  ;;  %s173_s5 = scalar_lea.sflag (!%p1227_p5), [#allocation3], %s172_s30 }
  0x23   : > { %s1276_s6 = scalar_lea.vmem (!%p1227_p5), [#allocation2], %s942_s4 }
  0x26   : > { %1147 = dma.done.wait (%p1220_p4), %s173_s5, 1024  }
  0x27   : > { %1149 = vsyncadd (%p1220_p4), %s173_s5, 4294966272 }
  0x28   : > { %1151 = dma.done.wait (%p38_p1), [#allocation5], 18432  }
  0x29   : > { %1153 = vsyncadd (%p38_p1), [#allocation5], 4294948864  ;;  %v255_v0 = vld [vmem:[#allocation4 + $0x1f8] sm:$0xff]  ;;  %v254_v1 = vld [vmem:[#allocation4 + $0x1f0] sm:$0xff]  ;;  %p205_p1 = scmp.lt.s32.totalorder %s1212_s16, 1 }
  0x2a   : > { %256 = vmatpush.msra.mxu0 %v255_v0  ;;  %984 = vmatpush.msra.mxu1 %v255_v0  ;;  %v349_v2 = vld [vmem:[#allocation4 + $0x378] sm:$0xff]  ;;  %v348_v3 = vld [vmem:[#allocation4 + $0x370] sm:$0xff]  ;;  %v253_v4 = vld [vmem:[#allocation4 + $0x1e8] sm:$0xff] }
  0x2b   : > { %350 = vmatpush.msra.mxu2 %v349_v2  ;;  %v347_v5 = vld [vmem:[#allocation4 + $0x368] sm:$0xff]  ;;  %v252_v6 = vld [vmem:[#allocation4 + $0x1e0] sm:$0xff]  ;;  %v251_v8 = vld [vmem:[#allocation4 + $0x1d8] sm:$0xff]  ;;  %s1472_s16 = smov (!%p205_p1, %s1212_s16), 1 }
  0x2c   : > { %257 = vmatpush.msra.mxu0 %v254_v1  ;;  %985 = vmatpush.msra.mxu1 %v254_v1  ;;  %v346_v7 = vld [vmem:[#allocation4 + $0x360] sm:$0xff]  ;;  %v442_v9 = vld [vmem:[#allocation4 + $0x278] sm:$0xff]  ;;  %v441_v11 = vld [vmem:[#allocation4 + $0x270] sm:$0xff]  ;;  %s1016_s17 = smul.u32 48, %s1472_s16 }
  0x2d   : > { %351 = vmatpush.msra.mxu2 %v348_v3  ;;  %v345_v10 = vld [vmem:[#allocation4 + $0x358] sm:$0xff]  ;;  %v250_v12 = vld [vmem:[#allocation4 + $0x1d0] sm:$0xff]  ;;  %443 = vmatpush.msra.mxu3 %v442_v9  ;;  %v440_v14 = vld [vmem:[#allocation4 + $0x268] sm:$0xff] }
  0x2e   : > { %258 = vmatpush.msra.mxu0 %v253_v4  ;;  %986 = vmatpush.msra.mxu1 %v253_v4  ;;  %v344_v13 = vld [vmem:[#allocation4 + $0x350] sm:$0xff]  ;;  %v249_v15 = vld [vmem:[#allocation4 + $0x1c8] sm:$0xff]  ;;  %v439_v17 = vld [vmem:[#allocation4 + $0x260] sm:$0xff]  ;;  %s1377_s26 = scalar_lea.vmem %s1463_s3, %s1016_s17 }
  0x2f   : > { %352 = vmatpush.msra.mxu2 %v347_v5  ;;  %444 = vmatpush.msra.mxu3 %v441_v11  ;;  %v343_v16 = vld [vmem:[#allocation4 + $0x348] sm:$0xff]  ;;  %v248_v18 = vld [vmem:[#allocation4 + $0x1c0] sm:$0xff]  ;;  %v438_v20 = vld [vmem:[#allocation4 + $0x258] sm:$0xff] }
  0x30   : > { %259 = vmatpush.msra.mxu0 %v252_v6  ;;  %987 = vmatpush.msra.mxu1 %v252_v6  ;;  %v342_v19 = vld [vmem:[#allocation4 + $0x340] sm:$0xff]  ;;  %v247_v21 = vld [vmem:[#allocation4 + $0x1b8] sm:$0xff]  ;;  %v437_v23 = vld [vmem:[#allocation4 + $0x250] sm:$0xff] }
  0x31   : > { %353 = vmatpush.msra.mxu2 %v346_v7  ;;  %445 = vmatpush.msra.mxu3 %v440_v14  ;;  %v341_v22 = vld [vmem:[#allocation4 + $0x338] sm:$0xff]  ;;  %v246_v24 = vld [vmem:[#allocation4 + $0x1b0] sm:$0xff]  ;;  %v436_v26 = vld [vmem:[#allocation4 + $0x248] sm:$0xff] }
  0x32   : > { %260 = vmatpush.msra.mxu0 %v251_v8  ;;  %988 = vmatpush.msra.mxu1 %v251_v8  ;;  %v340_v25 = vld [vmem:[#allocation4 + $0x330] sm:$0xff]  ;;  %v245_v27 = vld [vmem:[#allocation4 + $0x1a8] sm:$0xff]  ;;  %v435_v29 = vld [vmem:[#allocation4 + $0x240] sm:$0xff] }
  0x33   : > { %354 = vmatpush.msra.mxu2 %v345_v10  ;;  %446 = vmatpush.msra.mxu3 %v439_v17  ;;  %v339_v28 = vld [vmem:[#allocation4 + $0x328] sm:$0xff]  ;;  %v244_v30 = vld [vmem:[#allocation4 + $0x1a0] sm:$0xff]  ;;  %v434_v32 = vld [vmem:[#allocation4 + $0x238] sm:$0xff] }
  0x34   : > { %261 = vmatpush.msra.mxu0 %v250_v12  ;;  %989 = vmatpush.msra.mxu1 %v250_v12  ;;  %v338_v31 = vld [vmem:[#allocation4 + $0x320] sm:$0xff]  ;;  %v243_v33 = vld [vmem:[#allocation4 + $0x198] sm:$0xff]  ;;  %v433_v35 = vld [vmem:[#allocation4 + $0x230] sm:$0xff] }
  0x35   : > { %355 = vmatpush.msra.mxu2 %v344_v13  ;;  %447 = vmatpush.msra.mxu3 %v438_v20  ;;  %v337_v34 = vld [vmem:[#allocation4 + $0x318] sm:$0xff]  ;;  %v242_v36 = vld [vmem:[#allocation4 + $0x190] sm:$0xff]  ;;  %v432_v38 = vld [vmem:[#allocation4 + $0x228] sm:$0xff] }
  0x36   : > { %262 = vmatpush.msra.mxu0 %v249_v15  ;;  %990 = vmatpush.msra.mxu1 %v249_v15  ;;  %v336_v37 = vld [vmem:[#allocation4 + $0x310] sm:$0xff]  ;;  %v241_v39 = vld [vmem:[#allocation4 + $0x188] sm:$0xff]  ;;  %v431_v41 = vld [vmem:[#allocation4 + $0x220] sm:$0xff] }
  0x37   : > { %356 = vmatpush.msra.mxu2 %v343_v16  ;;  %448 = vmatpush.msra.mxu3 %v437_v23  ;;  %v335_v40 = vld [vmem:[#allocation4 + $0x308] sm:$0xff]  ;;  %v240_v42 = vld [vmem:[#allocation4 + $0x180] sm:$0xff]  ;;  %v231_v44 = vld [vmem:[#allocation4 + $0x78] sm:$0xff] }
  0x38   : > { %263 = vmatpush.msra.mxu0 %v248_v18  ;;  %991 = vmatpush.msra.mxu1 %v248_v18  ;;  %v1287_v43 = vld [vmem:[%s1276_s6 + $0x8] sm:$0xff]  ;;  %v419_v45 = vld [vmem:[#allocation4 + $0xf8] sm:$0xff]  ;;  %v334_v46 = vld [vmem:[#allocation4 + $0x300] sm:$0xff] }
  0x39   : > { %357 = vmatpush.msra.mxu2 %v342_v19  ;;  %449 = vmatpush.msra.mxu3 %v436_v26  ;;  %v230_v47 = vld [vmem:[#allocation4 + $0x70] sm:$0xff]  ;;  %v430_v50 = vld [vmem:[#allocation4 + $0x218] sm:$0xff]  ;;  %v229_v51 = vld [vmem:[#allocation4 + $0x68] sm:$0xff] }
  0x3a   : > { %264 = vmatpush.msra.mxu0 %v247_v21  ;;  %992 = vmatpush.msra.mxu1 %v247_v21  ;;  %v1290_v48 = vld [vmem:[%s1276_s6 + $0x10] sm:$0xff]  ;;  %v658_v52 = vld [vmem:[#allocation4 + $0x2f8] sm:$0xff]  ;;  %v417_v53 = vld [vmem:[#allocation4 + $0xe8] sm:$0xff] }
  0x3b   : > { %358 = vmatpush.msra.mxu2 %v341_v22  ;;  %450 = vmatpush.msra.mxu3 %v435_v29  ;;  %v418_v49 = vld [vmem:[#allocation4 + $0xf0] sm:$0xff]  ;;  %v228_v55 = vld [vmem:[#allocation4 + $0x60] sm:$0xff]  ;;  %v1295_v58 = vld [vmem:[%s1276_s6 + $0x28] sm:$0xff] }
  0x3c   : > { %265 = vmatpush.msra.mxu0 %v246_v24  ;;  %993 = vmatpush.msra.mxu1 %v246_v24  ;;  %v429_v54 = vld [vmem:[#allocation4 + $0x210] sm:$0xff]  ;;  %v416_v57 = vld [vmem:[#allocation4 + $0xe0] sm:$0xff]  ;;  %v227_v59 = vld [vmem:[#allocation4 + $0x58] sm:$0xff] }
  0x3d   : > { %359 = vmatpush.msra.mxu2 %v340_v25  ;;  %451 = vmatpush.msra.mxu3 %v434_v32  ;;  %v657_v56 = vld [vmem:[#allocation4 + $0x2f0] sm:$0xff]  ;;  %v415_v60 = vld [vmem:[#allocation4 + $0xd8] sm:$0xff]  ;;  %v428_v61 = vld [vmem:[#allocation4 + $0x208] sm:$0xff] }
  0x3e   : > { %266 = vmatpush.msra.mxu0 %v245_v27  ;;  %994 = vmatpush.msra.mxu1 %v245_v27  ;;  %v226_v62 = vld [vmem:[#allocation4 + $0x50] sm:$0xff]  ;;  %v1298_v63 = vld [vmem:[%s1276_s6 + $0x18] sm:$0xff]  ;;  %v427_v1 = vld [vmem:[#allocation4 + $0x200] sm:$0xff] }
  0x3f   : > { %360 = vmatpush.msra.mxu2 %v339_v28  ;;  %452 = vmatpush.msra.mxu3 %v433_v35  ;;  %v414_v0 = vld [vmem:[#allocation4 + $0xd0] sm:$0xff]  ;;  %v225_v2 = vld [vmem:[#allocation4 + $0x48] sm:$0xff]  ;;  %v224_v5 = vld [vmem:[#allocation4 + $0x40] sm:$0xff] }
  0x40   : > { %267 = vmatpush.msra.mxu0 %v244_v30  ;;  %995 = vmatpush.msra.mxu1 %v244_v30  ;;  %v413_v3 = vld [vmem:[#allocation4 + $0xc8] sm:$0xff]  ;;  %v635_v6 = vld [vmem:[#allocation4 + $0x178] sm:$0xff]  ;;  %v412_v7 = vld [vmem:[#allocation4 + $0xc0] sm:$0xff] }
  0x41   : > { %361 = vmatpush.msra.mxu2 %v338_v31  ;;  %453 = vmatpush.msra.mxu3 %v432_v38  ;;  %v656_v4 = vld [vmem:[#allocation4 + $0x2e8] sm:$0xff]  ;;  %v1305_v8 = vld [vmem:[%s1276_s6 + $0x30] sm:$0xff]  ;;  %v223_v9 = vld [vmem:[#allocation4 + $0x38] sm:$0xff] }
  0x42   : > { %268 = vmatpush.msra.mxu0 %v243_v33  ;;  %996 = vmatpush.msra.mxu1 %v243_v33  ;;  %v411_v10 = vld [vmem:[#allocation4 + $0xb8] sm:$0xff]  ;;  %v655_v11 = vld [vmem:[#allocation4 + $0x2e0] sm:$0xff]  ;;  %v222_v12 = vld [vmem:[#allocation4 + $0x30] sm:$0xff] }
  0x43   : > { %362 = vmatpush.msra.mxu2 %v337_v34  ;;  %454 = vmatpush.msra.mxu3 %v431_v41  ;;  %v1308_v13 = vld [vmem:[%s1276_s6 + $0x20] sm:$0xff]  ;;  %v410_v14 = vld [vmem:[#allocation4 + $0xb0] sm:$0xff]  ;;  %v654_v15 = vld [vmem:[#allocation4 + $0x2d8] sm:$0xff] }
  0x44   : > { %269 = vmatpush.msra.mxu0 %v242_v36  ;;  %997 = vmatpush.msra.mxu1 %v242_v36  ;;  %v221_v16 = vld [vmem:[#allocation4 + $0x28] sm:$0xff]  ;;  %v653_v18 = vld [vmem:[#allocation4 + $0x2d0] sm:$0xff]  ;;  %v220_v19 = vld [vmem:[#allocation4 + $0x20] sm:$0xff] }
  0x45   : > { %363 = vmatpush.msra.mxu2 %v336_v37  ;;  %455 = vmatpush.msra.mxu3 %v430_v50  ;;  %v409_v17 = vld [vmem:[#allocation4 + $0xa8] sm:$0xff]  ;;  %v634_v20 = vld [vmem:[#allocation4 + $0x170] sm:$0xff]  ;;  %v408_v21 = vld [vmem:[#allocation4 + $0xa0] sm:$0xff] }
  0x46   : > { %270 = vmatpush.msra.mxu0 %v241_v39  ;;  %998 = vmatpush.msra.mxu1 %v241_v39  ;;  %v652_v22 = vld [vmem:[#allocation4 + $0x2c8] sm:$0xff]  ;;  %v219_v23 = vld [vmem:[#allocation4 + $0x18] sm:$0xff]  ;;  %v651_v25 = vld [vmem:[#allocation4 + $0x2c0] sm:$0xff] }
  0x47   : > { %364 = vmatpush.msra.mxu2 %v335_v40  ;;  %456 = vmatpush.msra.mxu3 %v429_v54  ;;  %v407_v24 = vld [vmem:[#allocation4 + $0x98] sm:$0xff]  ;;  %v218_v26 = vld [vmem:[#allocation4 + $0x10] sm:$0xff]  ;;  %v217_v29 = vld [vmem:[#allocation4 + $0x8] sm:$0xff] }
  0x48   : > { %271 = vmatpush.msra.mxu0 %v240_v42  ;;  %999 = vmatpush.msra.mxu1 %v240_v42  ;;  %v406_v27 = vld [vmem:[#allocation4 + $0x90] sm:$0xff]  ;;  %v650_v28 = vld [vmem:[#allocation4 + $0x2b8] sm:$0xff]  ;;  %v405_v30 = vld [vmem:[#allocation4 + $0x88] sm:$0xff] }
  0x49   : > { %272 = vmatmul.f32.vlgmr.msra.gmra.mxu0 %v1287_v43  ;;  %365 = vmatpush.msra.mxu2 %v334_v46  ;;  %v633_v31 = vld [vmem:[#allocation4 + $0x168] sm:$0xff]  ;;  %v216_v32 = vld [vmem:[#allocation4] sm:$0xff]  ;;  %v649_v33 = vld [vmem:[#allocation4 + $0x2b0] sm:$0xff] }
  0x4a   : > { %291 = vmatpush.msrb.mxu1 %v231_v44  ;;  %478 = vmatpush.msrb.mxu0 %v419_v45  ;;  %v1317_v34 = vld [vmem:[%s1276_s6] sm:$0xff]  ;;  %v535_v36 = vld [vmem:[#allocation4 + $0x3f8] sm:$0xff]  ;;  %v648_v37 = vld [vmem:[#allocation4 + $0x2a8] sm:$0xff] }
  0x4b   : > { %366 = vmatmul.f32.vlgmr.msra.gmra.mxu2 %v1290_v48  ;;  %284 = vmatmul.f32.vlgmr.msra.gmra.mxu1 %v1295_v58  ;;  %v404_v35 = vld [vmem:[#allocation4 + $0x80] sm:$0xff]  ;;  %v534_v39 = vld [vmem:[#allocation4 + $0x3f0] sm:$0xff]  ;;  %v631_v41 = vld [vmem:[#allocation4 + $0x158] sm:$0xff] }
  0x4c   : > { %292 = vmatpush.msrb.mxu1 %v230_v47  ;;  %479 = vmatpush.msrb.mxu0 %v418_v49  ;;  %v632_v38 = vld [vmem:[#allocation4 + $0x160] sm:$0xff]  ;;  %v533_v42 = vld [vmem:[#allocation4 + $0x3e8] sm:$0xff]  ;;  %v646_v44 = vld [vmem:[#allocation4 + $0x298] sm:$0xff] }
  0x4d   : > { %659 = vmatpush.msrb.mxu2 %v658_v52  ;;  %457 = vmatpush.msra.mxu3 %v428_v61  ;;  %v647_v40 = vld [vmem:[#allocation4 + $0x2a0] sm:$0xff]  ;;  %v630_v45 = vld [vmem:[#allocation4 + $0x150] sm:$0xff]  ;;  %v1323_v47 = vld [vmem:[#allocation4 + $0x478] sm:$0xff] }
  0x4e   : > { %293 = vmatpush.msrb.mxu1 %v229_v51  ;;  %480 = vmatpush.msrb.mxu0 %v417_v53  ;;  %v532_v46 = vld [vmem:[#allocation4 + $0x3e0] sm:$0xff]  ;;  %v645_v49 = vld [vmem:[#allocation4 + $0x290] sm:$0xff]  ;;  %v531_v50 = vld [vmem:[#allocation4 + $0x3d8] sm:$0xff] }
  0x4f   : > { %660 = vmatpush.msrb.mxu2 %v657_v56  ;;  %458 = vmatpush.msra.mxu3 %v427_v1  ;;  %v629_v51 = vld [vmem:[#allocation4 + $0x148] sm:$0xff]  ;;  %v1329_v53 = vld [vmem:[%s1276_s6 + $0x38] sm:$0xff]  ;;  %v530_v54 = vld [vmem:[#allocation4 + $0x3d0] sm:$0xff] }
  0x50   : > { %294 = vmatpush.msrb.mxu1 %v228_v55  ;;  %481 = vmatpush.msrb.mxu0 %v416_v57  ;;  %v644_v52 = vld [vmem:[#allocation4 + $0x288] sm:$0xff]  ;;  %v628_v55 = vld [vmem:[#allocation4 + $0x140] sm:$0xff]  ;;  %v1332_v56 = vld [vmem:[#allocation4 + $0x470] sm:$0xff] }
  0x51   : > { %275 = vmatmul.f32.gmra.mxu0 %v1290_v48  ;;  %459 = vmatmul.f32.vlgmr.msra.gmra.mxu3 %v1287_v43  ;;  %v529_v57 = vld [vmem:[#allocation4 + $0x3c8] sm:$0xff]  ;;  %v528_v61 = vld [vmem:[#allocation4 + $0x3c0] sm:$0xff]  ;;  %v527_v1 = vld [vmem:[#allocation4 + $0x3b8] sm:$0xff] }
  0x52   : > { %295 = vmatpush.msrb.mxu1 %v227_v59  ;;  %482 = vmatpush.msrb.mxu0 %v415_v60  ;;  %v643_v59 = vld [vmem:[#allocation4 + $0x280] sm:$0xff]  ;;  %v627_v60 = vld [vmem:[#allocation4 + $0x138] sm:$0xff] }
  0x53   : > { %369 = vmatmul.f32.gmra.mxu2 %v1298_v63  ;;  %694 = vmatpush.msrb.mxu3 %v635_v6  ;;  %v624_v6 = vld [vmem:[#allocation4 + $0x120] sm:$0xff] }
  0x54   : > { %296 = vmatpush.msrb.mxu1 %v226_v62  ;;  %483 = vmatpush.msrb.mxu0 %v414_v0  ;;  %v749_v62 = vld [vmem:[#allocation4 + $0x468] sm:$0xff]  ;;  %v626_v0 = vld [vmem:[#allocation4 + $0x130] sm:$0xff] }
  0x55   : > { %661 = vmatpush.msrb.mxu2 %v656_v4  ;;  %287 = vmatmul.f32.gmra.mxu1 %v1305_v8  ;;  %v526_v4 = vld [vmem:[#allocation4 + $0x3b0] sm:$0xff] }
  0x56   : > { %297 = vmatpush.msrb.mxu1 %v225_v2  ;;  %484 = vmatpush.msrb.mxu0 %v413_v3  ;;  %v748_v2 = vld [vmem:[#allocation4 + $0x460] sm:$0xff]  ;;  %v625_v3 = vld [vmem:[#allocation4 + $0x128] sm:$0xff] }
  0x57   : > { %662 = vmatpush.msrb.mxu2 %v655_v11  ;;  %695 = vmatpush.msrb.mxu3 %v634_v20  ;;  %v524_v11 = vld [vmem:[#allocation4 + $0x3a0] sm:$0xff] }
  0x58   : > { %298 = vmatpush.msrb.mxu1 %v224_v5  ;;  %485 = vmatpush.msrb.mxu0 %v412_v7  ;;  %v747_v5 = vld [vmem:[#allocation4 + $0x458] sm:$0xff]  ;;  %v525_v7 = vld [vmem:[#allocation4 + $0x3a8] sm:$0xff]  ;;  %v620_v20 = vld [vmem:[#allocation4 + $0x100] sm:$0xff] }
  0x59   : > { %278 = vmatmul.f32.gmra.mxu0 %v1298_v63  ;;  %663 = vmatpush.msrb.mxu2 %v654_v15  ;;  %v744_v15 = vld [vmem:[#allocation4 + $0x440] sm:$0xff] }
  0x5a   : > { %299 = vmatpush.msrb.mxu1 %v223_v9  ;;  %486 = vmatpush.msrb.mxu0 %v411_v10  ;;  %v746_v9 = vld [vmem:[#allocation4 + $0x450] sm:$0xff]  ;;  %v623_v10 = vld [vmem:[#allocation4 + $0x118] sm:$0xff] }
  0x5b   : > { %372 = vmatmul.f32.gmra.mxu2 %v1308_v13  ;;  %462 = vmatmul.f32.gmra.mxu3 %v1290_v48 }
  0x5c   : > { %300 = vmatpush.msrb.mxu1 %v222_v12  ;;  %487 = vmatpush.msrb.mxu0 %v410_v14  ;;  %v745_v12 = vld [vmem:[#allocation4 + $0x448] sm:$0xff]  ;;  %v622_v14 = vld [vmem:[#allocation4 + $0x110] sm:$0xff] }
  0x5d   : > { %664 = vmatpush.msrb.mxu2 %v653_v18  ;;  %696 = vmatpush.msrb.mxu3 %v633_v31  ;;  %v743_v18 = vld [vmem:[#allocation4 + $0x438] sm:$0xff] }
  0x5e   : > { %301 = vmatpush.msrb.mxu1 %v221_v16  ;;  %488 = vmatpush.msrb.mxu0 %v409_v17  ;;  %v523_v16 = vld [vmem:[#allocation4 + $0x398] sm:$0xff]  ;;  %v621_v17 = vld [vmem:[#allocation4 + $0x108] sm:$0xff] }
  0x5f   : > { %665 = vmatpush.msrb.mxu2 %v652_v22  ;;  %697 = vmatpush.msrb.mxu3 %v632_v38  ;;  %v521_v22 = vld [vmem:[#allocation4 + $0x388] sm:$0xff] }
  0x60   : > { %302 = vmatpush.msrb.mxu1 %v220_v19  ;;  %489 = vmatpush.msrb.mxu0 %v408_v21  ;;  %v522_v19 = vld [vmem:[#allocation4 + $0x390] sm:$0xff] }
  0x61   : > { %281 = vmatmul.f32.gmra.mxu0 %v1308_v13  ;;  %666 = vmatpush.msrb.mxu2 %v651_v25  ;;  %v742_v21 = vld [vmem:[#allocation4 + $0x430] sm:$0xff]  ;;  %v740_v25 = vld [vmem:[#allocation4 + $0x420] sm:$0xff] }
  0x62   : > { %303 = vmatpush.msrb.mxu1 %v219_v23  ;;  %490 = vmatpush.msrb.mxu0 %v407_v24  ;;  %v741_v23 = vld [vmem:[#allocation4 + $0x428] sm:$0xff]  ;;  %v520_v24 = vld [vmem:[#allocation4 + $0x380] sm:$0xff] }
  0x63   : > { %375 = vmatmul.f32.gmra.mxu2 %v1295_v58  ;;  %465 = vmatmul.f32.gmra.mxu3 %v1298_v63 }
  0x64   : > { %304 = vmatpush.msrb.mxu1 %v218_v26  ;;  %491 = vmatpush.msrb.mxu0 %v406_v27  ;;  %v739_v26 = vld [vmem:[#allocation4 + $0x418] sm:$0xff]  ;;  %v738_v27 = vld [vmem:[#allocation4 + $0x410] sm:$0xff] }
  0x65   : > { %667 = vmatpush.msrb.mxu2 %v650_v28  ;;  %698 = vmatpush.msrb.mxu3 %v631_v41  ;;  %v737_v28 = vld [vmem:[#allocation4 + $0x408] sm:$0xff] }
  0x66   : > { %305 = vmatpush.msrb.mxu1 %v217_v29  ;;  %492 = vmatpush.msrb.mxu0 %v405_v30  ;;  %v736_v29 = vld [vmem:[#allocation4 + $0x400] sm:$0xff] }
  0x67   : > { %668 = vmatpush.msrb.mxu2 %v649_v33  ;;  %699 = vmatpush.msrb.mxu3 %v630_v45 }
  0x68   : > { %306 = vmatpush.msrb.mxu1 %v216_v32  ;;  %493 = vmatpush.msrb.mxu0 %v404_v35 }
  0x69   : > { %307 = vmatmul.f32.vlgmr.msrb.gmra.mxu1 %v1317_v34  ;;  %494 = vmatmul.f32.vlgmr.msrb.gmra.mxu0 %v1317_v34 }
  0x6a   : > { %536 = vmatpush.msra.mxu1 %v535_v36  ;;  %669 = vmatpush.msrb.mxu2 %v648_v37 }
  0x6b   : > { %378 = vmatmul.f32.gmra.mxu2 %v1305_v8  ;;  %468 = vmatmul.f32.gmra.mxu3 %v1308_v13 }
  0x6c   : > { %537 = vmatpush.msra.mxu1 %v534_v39  ;;  %670 = vmatpush.msrb.mxu2 %v647_v40 }
  0x6d   : > { %752 = vmatpush.msra.mxu0 %v1323_v47  ;;  %700 = vmatpush.msrb.mxu3 %v629_v51 }
  0x6e   : > { %538 = vmatpush.msra.mxu1 %v533_v42  ;;  %671 = vmatpush.msrb.mxu2 %v646_v44 }
  0x6f   : > { %701 = vmatpush.msrb.mxu3 %v628_v55  ;;  %753 = vmatpush.msra.mxu0 %v1332_v56 }
  0x70   : > { %539 = vmatpush.msra.mxu1 %v532_v46  ;;  %672 = vmatpush.msrb.mxu2 %v645_v49 }
  0x71   : > { %310 = vmatmul.f32.gmra.mxu1 %v1287_v43  ;;  %497 = vmatmul.f32.gmra.mxu0 %v1287_v43 }
  0x72   : > { %540 = vmatpush.msra.mxu1 %v531_v50  ;;  %673 = vmatpush.msrb.mxu2 %v644_v52 }
  0x73   : > { %381 = vmatmul.f32.gmra.mxu2 %v1329_v53  ;;  %471 = vmatmul.f32.gmra.mxu3 %v1295_v58 }
  0x74   : > { %541 = vmatpush.msra.mxu1 %v530_v54  ;;  %674 = vmatpush.msrb.mxu2 %v643_v59 }
  0x75   : > { %702 = vmatpush.msrb.mxu3 %v627_v60  ;;  %754 = vmatpush.msra.mxu0 %v749_v62 }
  0x76   : > { %542 = vmatpush.msra.mxu1 %v529_v57  ;;  %1000 = vmatpush.msra.mxu2 %v1323_v47 }
  0x77   : > { %703 = vmatpush.msrb.mxu3 %v626_v0  ;;  %755 = vmatpush.msra.mxu0 %v748_v2 }
  0x78   : > { %543 = vmatpush.msra.mxu1 %v528_v61  ;;  %1001 = vmatpush.msra.mxu2 %v1332_v56 }
  0x79   : > { %313 = vmatmul.f32.gmra.mxu1 %v1290_v48  ;;  %500 = vmatmul.f32.gmra.mxu0 %v1290_v48 }
  0x7a   : > { %544 = vmatpush.msra.mxu1 %v527_v1  ;;  %704 = vmatpush.msrb.mxu3 %v625_v3 }
  0x7b   : > { %675 = vmatmul.f32.vlgmr.msrb.gmra.mxu2 %v1287_v43  ;;  %756 = vmatpush.msra.mxu0 %v747_v5 }
  0x7c   : > { %545 = vmatpush.msra.mxu1 %v526_v4  ;;  %705 = vmatpush.msrb.mxu3 %v624_v6 }
  0x7d   : > { %474 = vmatmul.f32.gmra.mxu3 %v1305_v8  ;;  %757 = vmatpush.msra.mxu0 %v746_v9 }
  0x7e   : > { %546 = vmatpush.msra.mxu1 %v525_v7  ;;  %706 = vmatpush.msrb.mxu3 %v623_v10 }
  0x7f   : > { %758 = vmatpush.msra.mxu0 %v745_v12  ;;  %1002 = vmatpush.msra.mxu2 %v749_v62 }
  0x80   : > { %547 = vmatpush.msra.mxu1 %v524_v11  ;;  %707 = vmatpush.msrb.mxu3 %v622_v14 }
  0x81   : > { %316 = vmatmul.f32.gmra.mxu1 %v1298_v63  ;;  %503 = vmatmul.f32.gmra.mxu0 %v1298_v63 }
  0x82   : > { %759 = vmatpush.msra.mxu0 %v744_v15  ;;  %548 = vmatpush.msra.mxu1 %v523_v16 }
  0x83   : > { %678 = vmatmul.f32.gmra.mxu2 %v1290_v48  ;;  %708 = vmatpush.msrb.mxu3 %v621_v17 }
  0x84   : > { %760 = vmatpush.msra.mxu0 %v743_v18  ;;  %549 = vmatpush.msra.mxu1 %v522_v19 }
  0x85   : > { %709 = vmatpush.msrb.mxu3 %v620_v20  ;;  %1003 = vmatpush.msra.mxu2 %v748_v2 }
  0x86   : > { %710 = vmatmul.f32.vlgmr.msrb.gmra.mxu3 %v1317_v34  ;;  %761 = vmatpush.msra.mxu0 %v742_v21 }
  0x87   : > { %550 = vmatpush.msra.mxu1 %v521_v22  ;;  %1004 = vmatpush.msra.mxu2 %v747_v5 }
  0x88   : > { %762 = vmatpush.msra.mxu0 %v741_v23 }
  0x89   : > { %319 = vmatmul.f32.gmra.mxu1 %v1308_v13  ;;  %506 = vmatmul.f32.gmra.mxu0 %v1308_v13 }
  0x8a   : > { %551 = vmatpush.msra.mxu1 %v520_v24  ;;  %763 = vmatpush.msra.mxu0 %v740_v25 }
  0x8b   : > { %681 = vmatmul.f32.gmra.mxu2 %v1298_v63 }
  0x8c   : > { %764 = vmatpush.msra.mxu0 %v739_v26  ;;  %1005 = vmatpush.msra.mxu2 %v746_v9 }
  0x8e   : > { %713 = vmatmul.f32.gmra.mxu3 %v1287_v43  ;;  %765 = vmatpush.msra.mxu0 %v738_v27 }
  0x8f   : > { %1006 = vmatpush.msra.mxu2 %v745_v12 }
  0x90   : > { %766 = vmatpush.msra.mxu0 %v737_v28 }
  0x91   : > { %322 = vmatmul.f32.gmra.mxu1 %v1295_v58  ;;  %509 = vmatmul.f32.gmra.mxu0 %v1295_v58 }
  0x92   : > { %767 = vmatpush.msra.mxu0 %v736_v29  ;;  %1007 = vmatpush.msra.mxu2 %v744_v15 }
  0x93   : > { %684 = vmatmul.f32.gmra.mxu2 %v1308_v13 }
  0x94   : > { %1008 = vmatpush.msra.mxu2 %v743_v18 }
  0x96   : > { %716 = vmatmul.f32.gmra.mxu3 %v1290_v48  ;;  %1009 = vmatpush.msra.mxu2 %v742_v21 }
  0x98   : > { %1010 = vmatpush.msra.mxu2 %v741_v23 }
  0x99   : > { %552 = vmatmul.f32.vlgmr.msra.gmra.mxu1 %v1290_v48  ;;  %768 = vmatmul.f32.vlgmr.msra.gmra.mxu0 %v1290_v48 }
  0x9a   : > { %1011 = vmatpush.msra.mxu2 %v740_v25 }
  0x9b   : > { %687 = vmatmul.f32.gmra.mxu2 %v1295_v58 }
  0x9c   : > { %1012 = vmatpush.msra.mxu2 %v739_v26 }
  0x9e   : > { %719 = vmatmul.f32.gmra.mxu3 %v1298_v63  ;;  %1013 = vmatpush.msra.mxu2 %v738_v27 }
  0xa0   : > { %1014 = vmatpush.msra.mxu2 %v737_v28 }
  0xa1   : > { %555 = vmatmul.f32.gmra.mxu1 %v1298_v63  ;;  %771 = vmatmul.f32.gmra.mxu0 %v1298_v63 }
  0xa2   : > { %1015 = vmatpush.msra.mxu2 %v736_v29 }
  0xa3   : > { %690 = vmatmul.f32.gmra.mxu2 %v1305_v8 }
  0xa6   : > { %722 = vmatmul.f32.gmra.mxu3 %v1308_v13 }
  0xa9   : > { %558 = vmatmul.f32.gmra.mxu1 %v1308_v13  ;;  %774 = vmatmul.f32.gmra.mxu0 %v1308_v13 }
  0xab   : > { %780 = vmatmul.f32.vlgmr.msra.gmra.mxu2 %v1305_v8 }
  0xae   : > { %725 = vmatmul.f32.gmra.mxu3 %v1295_v58 }
  0xb1   : > { %561 = vmatmul.f32.gmra.mxu1 %v1295_v58  ;;  %777 = vmatmul.f32.gmra.mxu0 %v1295_v58 }
  0xb3   : > { %783 = vmatmul.f32.gmra.mxu2 %v1329_v53 }
  0xb9   : > { %564 = vmatmul.f32.gmra.mxu1 %v1305_v8 }
  0xc1   : > { %567 = vmatmul.f32.gmra.mxu1 %v1329_v53 }
  0xc6   : > { %v273_v43 = vpop.f32.mrf.mxu0 }
  0xc8   : > { %v285_v13 = vpop.f32.mrf.mxu1 }
  0xce   : > { %v276_v48 = vpop.f32.mrf.mxu0  ;;  %v367_v63 = vpop.f32.mrf.mxu2 }
  0xd2   : > { %v288_v33 = vpop.f32.mrf.mxu1 }
  0xd4   : > { %v460_v32 = vpop.f32.mrf.mxu3 }
  0xd6   : > { %v279_v30 = vpop.f32.mrf.mxu0  ;;  %v370_v31 = vpop.f32.mrf.mxu2 }
  0xde   : > { %v282_v34 = vpop.f32.mrf.mxu0  ;;  %v373_v35 = vpop.f32.mrf.mxu2 }
  0xdf   : > { %v463_v36 = vpop.f32.mrf.mxu3 }
  0xe6   : > { %v308_v58 = vpop.f32.mrf.mxu1  ;;  %v495_v38 = vpop.f32.mrf.mxu0 }
  0xe7   : > { %v309_v37 = vadd.f32 %v308_v58, %v273_v43  ;;  %v376_v8 = vpop.f32.mrf.mxu2  ;;  %v466_v40 = vpop.f32.mrf.mxu3  ;;  %v496_v11 = vadd.f32 %v495_v38, %v460_v32  ;;  %v1405_v38 = vld [vmem:[%s1462_s2] ss:$0 sm:$0xff] }
  0xe9   : > { %v385_v39 = vadd.f32 %v367_v63, %v309_v37 }
  0xeb   : > { %391 = vst [vmem:[%s1377_s26] sm:$0x3f] %v385_v39 }
  0xee   : > { %v311_v41 = vpop.f32.mrf.mxu1  ;;  %v498_v44 = vpop.f32.mrf.mxu0 }
  0xef   : > { %v312_v42 = vadd.f32 %v311_v41, %v276_v48  ;;  %v379_v45 = vpop.f32.mrf.mxu2  ;;  %v1380_v47 = vpop.f32.mrf.mxu3  ;;  %v499_v21 = vadd.f32 %v498_v44, %v463_v36 }
  0xf1   : > { %v386_v46 = vadd.f32 %v370_v31, %v312_v42 }
  0xf2   : > { %v577_v18 = vld [vmem:[%s1377_s26] sm:$0x3f] }
  0xf3   : > { %392 = vst [vmem:[%s1377_s26 + $0x8] sm:$0x3f] %v386_v46 }
  0xf6   : > { %v314_v49 = vpop.f32.mrf.mxu1  ;;  %v501_v51 = vpop.f32.mrf.mxu0 }
  0xf7   : > { %v315_v50 = vadd.f32 %v314_v49, %v279_v30  ;;  %v382_v52 = vpop.f32.mrf.mxu2  ;;  %v1383_v54 = vpop.f32.mrf.mxu3 }
  0xf9   : > { %v387_v53 = vadd.f32 %v373_v35, %v315_v50 }
  0xfa   : > { %v578_v28 = vld [vmem:[%s1377_s26 + $0x8] sm:$0x3f] }
  0xfb   : > { %393 = vst [vmem:[%s1377_s26 + $0x10] sm:$0x3f] %v387_v53 }
  0xfe   : > { %v317_v55 = vpop.f32.mrf.mxu1  ;;  %v504_v57 = vpop.f32.mrf.mxu0 }
  0xff   : > { %v318_v56 = vadd.f32 %v317_v55, %v282_v34  ;;  %v676_v59 = vpop.f32.mrf.mxu2  ;;  %v505_v42 = vadd.f32 %v504_v57, %v1380_v47 }
 0x100   : > { %v1387_v61 = vpop.f32.mrf.mxu3 }
 0x101   : > { %v388_v60 = vadd.f32 %v376_v8, %v318_v56 }
 0x102   : > { %v579_v58 = vld [vmem:[%s1377_s26 + $0x10] sm:$0x3f] }
 0x103   : > { %394 = vst [vmem:[%s1377_s26 + $0x18] sm:$0x3f] %v388_v60 }
 0x106   : > { %v320_v62 = vpop.f32.mrf.mxu1  ;;  %v1389_v1 = vpop.f32.mrf.mxu0 }
 0x107   : > { %v321_v0 = vadd.f32 %v320_v62, %v285_v13  ;;  %v679_v2 = vpop.f32.mrf.mxu2  ;;  %v502_v13 = vadd.f32 %v501_v51, %v466_v40 }
 0x109   : > { %v389_v3 = vadd.f32 %v379_v45, %v321_v0  ;;  %v711_v5 = vpop.f32.mrf.mxu3  ;;  %v508_v0 = vadd.f32 %v1389_v1, %v1383_v54 }
 0x10a   : > { %v712_v22 = vadd.f32 %v711_v5, %v676_v59  ;;  %v580_v59 = vld [vmem:[%s1377_s26 + $0x18] sm:$0x3f] }
 0x10b   : > { %395 = vst [vmem:[%s1377_s26 + $0x20] sm:$0x3f] %v389_v3 }
 0x10e   : > { %v323_v4 = vpop.f32.mrf.mxu1  ;;  %v1392_v7 = vpop.f32.mrf.mxu0 }
 0x10f   : > { %v324_v6 = vadd.f32 %v323_v4, %v288_v33  ;;  %v682_v10 = vpop.f32.mrf.mxu2 }
 0x111   : > { %v390_v9 = vadd.f32 %v382_v52, %v324_v6  ;;  %v714_v16 = vpop.f32.mrf.mxu3 }
 0x112   : > { %v715_v31 = vadd.f32 %v714_v16, %v679_v2  ;;  %v581_v16 = vld [vmem:[%s1377_s26 + $0x20] sm:$0x3f] }
 0x113   : > { %396 = vst [vmem:[%s1377_s26 + $0x28] sm:$0x3f] %v390_v9 }
 0x116   : > { %v553_v12 = vpop.f32.mrf.mxu1  ;;  %v769_v15 = vpop.f32.mrf.mxu0 }
 0x117   : > { %v571_v14 = vadd.f32 %v553_v12, %v496_v11  ;;  %v685_v20 = vpop.f32.mrf.mxu2  ;;  %v787_v24 = vadd.f32 %v769_v15, %v712_v22 }
 0x119   : > { %v589_v17 = vrot.slane %v571_v14, 1  ;;  %v717_v29 = vpop.f32.mrf.mxu3  ;;  %v805_v43 = vrot.slane %v787_v24, 2 }
 0x11a   : > { %v718_v45 = vadd.f32 %v717_v29, %v682_v10  ;;  %v582_v29 = vld [vmem:[%s1377_s26 + $0x28] sm:$0x3f] }
 0x11b   : > { %v601_v19 = vadd.f32 %v589_v17, %v577_v18 }
 0x11d   : > { %607 = vst [vmem:[%s1377_s26] sm:$0x3f] %v601_v19  ;;  %v511_v19 = vadd.f32 %v1392_v7, %v1387_v61 }
 0x11e   : > { %v556_v23 = vpop.f32.mrf.mxu1  ;;  %v772_v26 = vpop.f32.mrf.mxu0 }
 0x11f   : > { %v572_v25 = vadd.f32 %v556_v23, %v499_v21  ;;  %v688_v32 = vpop.f32.mrf.mxu2  ;;  %v788_v34 = vadd.f32 %v772_v26, %v715_v31 }
 0x121   : > { %v590_v27 = vrot.slane %v572_v25, 1  ;;  %v806_v8 = vrot.slane %v788_v34, 2  ;;  %v720_v41 = vpop.f32.mrf.mxu3 }
 0x122   : > { %v721_v3 = vadd.f32 %v720_v41, %v685_v20 }
 0x123   : > { %v602_v48 = vadd.f32 %v590_v27, %v578_v28 }
 0x124   : > { %v793_v63 = vld [vmem:[%s1377_s26] sm:$0x3f] }
 0x125   : > { %v817_v30 = vadd.f32 %v805_v43, %v793_v63  ;;  %608 = vst [vmem:[%s1377_s26 + $0x8] sm:$0x3f] %v602_v48 }
 0x126   : > { %v559_v33 = vpop.f32.mrf.mxu1  ;;  %v775_v37 = vpop.f32.mrf.mxu0 }
 0x127   : > { %823 = vst [vmem:[%s1377_s26] sm:$0x3f] %v817_v30  ;;  %v573_v35 = vadd.f32 %v559_v33, %v502_v13  ;;  %v789_v51 = vadd.f32 %v775_v37, %v718_v45  ;;  %v691_v53 = vpop.f32.mrf.mxu2 }
 0x129   : > { %v591_v36 = vrot.slane %v573_v35, 1  ;;  %v807_v47 = vrot.slane %v789_v51, 2  ;;  %v723_v5 = vpop.f32.mrf.mxu3 }
 0x12a   : > { %v724_v1 = vadd.f32 %v723_v5, %v688_v32 }
 0x12b   : > { %v603_v39 = vadd.f32 %v591_v36, %v579_v58 }
 0x12c   : > { %v794_v40 = vld [vmem:[%s1377_s26 + $0x8] sm:$0x3f] }
 0x12d   : > { %v818_v44 = vadd.f32 %v806_v8, %v794_v40  ;;  %609 = vst [vmem:[%s1377_s26 + $0x10] sm:$0x3f] %v603_v39 }
 0x12e   : > { %v829_v46 = vld [vmem:[%s1377_s26] sm:$0x3f]  ;;  %v562_v49 = vpop.f32.mrf.mxu1  ;;  %v778_v62 = vpop.f32.mrf.mxu0 }
 0x12f   : > { %v839_v50 = vadd.f32 %v1405_v38, %v829_v46  ;;  %824 = vst [vmem:[%s1377_s26 + $0x8] sm:$0x3f] %v818_v44  ;;  %v574_v52 = vadd.f32 %v562_v49, %v505_v42  ;;  %v790_v10 = vadd.f32 %v778_v62, %v721_v3  ;;  %v781_v15 = vpop.f32.mrf.mxu2 }
 0x130   : > { %v791_v24 = vadd.f32 %v781_v15, %v724_v1 }
 0x131   : > { %v845_v55 = vmax.f32 %v839_v50, 0.0  ;;  %v592_v56 = vrot.slane %v574_v52, 1  ;;  %v808_v54 = vrot.slane %v790_v10, 2  ;;  %v726_v26 = vpop.f32.mrf.mxu3 }
 0x132   : > { %v809_v61 = vrot.slane %v791_v24, 2  ;;  %v727_v7 = vadd.f32 %v726_v26, %v691_v53 }
 0x133   : > { %851 = vst [vmem:[%s1377_s26] sm:$0x3f] %v845_v55  ;;  %v604_v57 = vadd.f32 %v592_v56, %v580_v59 }
 0x134   : > { %v795_v60 = vld [vmem:[%s1377_s26 + $0x10] sm:$0x3f] }
 0x135   : > { %v819_v2 = vadd.f32 %v807_v47, %v795_v60  ;;  %610 = vst [vmem:[%s1377_s26 + $0x18] sm:$0x3f] %v604_v57 }
 0x136   : > { %v830_v4 = vld [vmem:[%s1377_s26 + $0x8] sm:$0x3f]  ;;  %v565_v6 = vpop.f32.mrf.mxu1 }
 0x137   : > { %v840_v9 = vadd.f32 %v1405_v38, %v830_v4  ;;  %825 = vst [vmem:[%s1377_s26 + $0x10] sm:$0x3f] %v819_v2  ;;  %v575_v11 = vadd.f32 %v565_v6, %v508_v0  ;;  %v784_v63 = vpop.f32.mrf.mxu2 }
 0x138   : > { %v792_v32 = vadd.f32 %v784_v63, %v727_v7 }
 0x139   : > { %v846_v12 = vmax.f32 %v840_v9, 0.0  ;;  %v593_v14 = vrot.slane %v575_v11, 1 }
 0x13a   : > { %v810_v34 = vrot.slane %v792_v32, 2 }
 0x13b   : > { %852 = vst [vmem:[%s1377_s26 + $0x8] sm:$0x3f] %v846_v12  ;;  %v605_v17 = vadd.f32 %v593_v14, %v581_v16 }
 0x13c   : > { %v796_v18 = vld [vmem:[%s1377_s26 + $0x18] sm:$0x3f] }
 0x13d   : > { %v820_v20 = vadd.f32 %v808_v54, %v796_v18  ;;  %611 = vst [vmem:[%s1377_s26 + $0x20] sm:$0x3f] %v605_v17 }
 0x13e   : > { %v831_v21 = vld [vmem:[%s1377_s26 + $0x10] sm:$0x3f]  ;;  %v568_v22 = vpop.f32.mrf.mxu1 }
 0x13f   : > { %v841_v23 = vadd.f32 %v1405_v38, %v831_v21  ;;  %826 = vst [vmem:[%s1377_s26 + $0x18] sm:$0x3f] %v820_v20  ;;  %v576_v25 = vadd.f32 %v568_v22, %v511_v19 }
 0x141   : > { %v847_v27 = vmax.f32 %v841_v23, 0.0  ;;  %v594_v28 = vrot.slane %v576_v25, 1 }
 0x143   : > { %853 = vst [vmem:[%s1377_s26 + $0x10] sm:$0x3f] %v847_v27  ;;  %v606_v43 = vadd.f32 %v594_v28, %v582_v29 }
 0x144   : > { %v797_v48 = vld [vmem:[%s1377_s26 + $0x20] sm:$0x3f] }
 0x145   : > { %v821_v13 = vadd.f32 %v809_v61, %v797_v48  ;;  %612 = vst [vmem:[%s1377_s26 + $0x28] sm:$0x3f] %v606_v43 }
 0x146   : > { %v832_v30 = vld [vmem:[%s1377_s26 + $0x18] sm:$0x3f] }
 0x147   : > { %v842_v31 = vadd.f32 %v1405_v38, %v832_v30  ;;  %827 = vst [vmem:[%s1377_s26 + $0x20] sm:$0x3f] %v821_v13 }
 0x149   : > { %v848_v33 = vmax.f32 %v842_v31, 0.0 }
 0x14b   : > { %854 = vst [vmem:[%s1377_s26 + $0x18] sm:$0x3f] %v848_v33 }
 0x14c   : > { %v798_v35 = vld [vmem:[%s1377_s26 + $0x28] sm:$0x3f] }
 0x14d   : > { %v822_v36 = vadd.f32 %v810_v34, %v798_v35 }
 0x14e   : > { %v833_v58 = vld [vmem:[%s1377_s26 + $0x20] sm:$0x3f] }
 0x14f   : > { %v843_v37 = vadd.f32 %v1405_v38, %v833_v58  ;;  %828 = vst [vmem:[%s1377_s26 + $0x28] sm:$0x3f] %v822_v36 }
 0x151   : > { %v849_v8 = vmax.f32 %v843_v37, 0.0 }
 0x153   : > { %855 = vst [vmem:[%s1377_s26 + $0x20] sm:$0x3f] %v849_v8 }
 0x156   : > { %v834_v39 = vld [vmem:[%s1377_s26 + $0x28] sm:$0x3f] }
 0x157   : > { %v844_v40 = vadd.f32 %v1405_v38, %v834_v39 }
 0x159   : > { %v850_v41 = vmax.f32 %v844_v40, 0.0 }
 0x15b   : > { %856 = vst [vmem:[%s1377_s26 + $0x28] sm:$0x3f] %v850_v41 }
 0x15c PF: > { %p14_p4 = scmp.ge.s32.totalorder %s1236_s24, 4   ;;  %s1467_s12 = smov %s1160_s13 }
 0x15d   : > { %s1468_s13 = smov %s1164_s14  ;;  %s1469_s14 = smov %s1249_s29 }
 0x15e   : > { %s1470_s15 = smov %s1236_s24  ;;  %16 = sbr.rel (!%p14_p4) target bundleno = 4 (0x4), region = 86 }
 0x163   :  { %878 = vsyncpa [#allocation3], 1 }
 0x164   :  { %880 = vsyncpa [#allocation3 + $0x1], 1 }
 0x165   :  { %881 = vsyncpa [#allocation5], 1 }

</bundles_post_ra>
